<compile_context>
chip_gen: v7x
topology: tpu7x:2x2x1
jax: 0.10.0
libtpu: 0.0.40
codegen_flags: <defaults>
</compile_context>

<pallas_src>
import jax
import jax.numpy as jnp
from jax import lax
from jax.experimental import pallas as pl
from jax.experimental.pallas import tpu as pltpu

_EPS = 1e-12
_LANES = 128


# ---------------------------------------------------------------------------
# Kernels
# ---------------------------------------------------------------------------
def _l2norm_kernel(x_ref, o_ref):
    """Fallback path: (tile_m, C) tile, reduce along lanes (last dim)."""
    x = x_ref[...].astype(jnp.float32)
    ss = jnp.sum(x * x, axis=-1, keepdims=True)              # (tile_m, 1)
    inv = lax.rsqrt(jnp.maximum(ss, _EPS * _EPS))             # EUP
    o_ref[...] = (x * inv).astype(o_ref.dtype)


def _l2norm_packed_kernel(x_ref, bd_ref, o_ref):
    """Lane-dense path: (tile_m, L) tile with L = k*C = 128.

    bd_ref is an (L, L) block-diagonal ones matrix; (x*x) @ bd computes the
    per-C-segment sum of squares and broadcasts it back to every lane of the
    segment in one MXU op, keeping every vector op at full 128-lane width.
    """
    x = x_ref[...].astype(jnp.float32)
    ss = jnp.dot(x * x, bd_ref[...], preferred_element_type=jnp.float32)
    inv = lax.rsqrt(jnp.maximum(ss, _EPS * _EPS))             # EUP
    o_ref[...] = (x * inv).astype(o_ref.dtype)


# ---------------------------------------------------------------------------
# Tiling / budgeting helpers
# ---------------------------------------------------------------------------
def _sublane_multiple(dtype) -> int:
    # fp32 -> 8, bf16/fp16 -> 16, int8/fp8 -> 32 (sub-32-bit sublane packing).
    itemsize = jnp.dtype(dtype).itemsize
    return max(8, 32 // itemsize)


def _round_up(a: int, b: int) -> int:
    return -(-a // b) * b


def _vmem_budget() -> tuple[int, int]:
    """(target_block_bytes, vmem_limit_cap_bytes), generation-aware but guarded.

    Defaults are safe for v7x (64 MiB per-TC VMEM).  If the runtime reports a
    big-VMEM part (v5e/v6e, 128 MiB), push blocks to ~8 MiB to shave per-step
    overhead further.
    """
    target, cap = 4 << 20, 48 << 20
    try:
        info = pltpu.get_tpu_info()
        vmem = int(getattr(info, "vmem_capacity_bytes", 0))
        if vmem >= 100 << 20:
            target, cap = 8 << 20, 80 << 20
    except Exception:
        pass
    return target, cap


def _choose_tile_m(m_rows: int, lane_c: int, dtype, target_block_bytes: int) -> int:
    """Largest sublane-aligned row tile; byte-based cap only (no row cap).

    Sized off the fp32 footprint per row (lane_c * 4) so the in-kernel f32
    intermediates for sub-32-bit inputs are covered by the same budget.
    Also clamped so the grid has >= 2 steps whenever there are at least two
    sublane groups of rows (v7x megacore sharding).
    """
    sub = _sublane_multiple(dtype)
    row_bytes_f32 = max(1, lane_c) * 4
    tile_m = max(sub, target_block_bytes // row_bytes_f32)

    m_rounded = _round_up(max(1, m_rows), sub)
    if m_rounded >= 2 * sub:
        # guarantee at least two grid steps so both TCs get work on v7x
        tile_m = min(tile_m, _round_up(-(-m_rounded // 2), sub))
    tile_m = min(tile_m, m_rounded)
    tile_m = max(sub, (tile_m // sub) * sub)
    return int(tile_m)


def _block_diag_ones(lanes: int, seg: int) -> jax.Array:
    idx = jnp.arange(lanes) // seg
    return (idx[:, None] == idx[None, :]).astype(jnp.float32)


# ---------------------------------------------------------------------------
# Public entry point
# ---------------------------------------------------------------------------
def l2norm(x: jax.Array) -> jax.Array:
    """L2-normalize along the last axis. x: (..., C). Matches F.normalize(x, dim=-1)."""
    orig_shape = x.shape
    C = orig_shape[-1]
    x2d = x.reshape(-1, C)
    M = x2d.shape[0]
    itemsize = jnp.dtype(x.dtype).itemsize

    # Lane-dense packing for small C: (M, C) -> (M/k, k*C) with k*C == 128.
    pack = 1
    if 0 < C < _LANES and _LANES % C == 0:
        k = _LANES // C
        if M % k == 0:
            pack = k

    if pack > 1:
        L = pack * C
        Mw = M // pack
        xw = x2d.reshape(Mw, L)          # contiguous reshape: no HBM copy
    else:
        L = C
        Mw = M
        xw = x2d

    target_block_bytes, vmem_cap = _vmem_budget()
    tile_m = _choose_tile_m(Mw, L, x.dtype, target_block_bytes)

    # VMEM budget: double-buffered in + out blocks in storage dtype, plus the
    # fp32 intermediates the body materializes (x.astype(f32), x*x, result).
    block_store_bytes = tile_m * L * itemsize
    block_f32_bytes = tile_m * L * 4
    vmem_limit = min(
        max(4 * block_store_bytes + 3 * block_f32_bytes + (2 << 20), 32 << 20),
        vmem_cap,
    )

    grid = (pl.cdiv(Mw, tile_m),)
    compiler_params = pltpu.CompilerParams(
        dimension_semantics=("parallel",),
        vmem_limit_bytes=int(vmem_limit),
    )

    if pack > 1:
        bd = _block_diag_ones(L, C)
        cost = pl.CostEstimate(
            flops=int(3 * M * C + 2 * Mw * L * L),   # elementwise + BD matmul
            transcendentals=int(Mw * L),             # rsqrt on broadcast segment sums
            bytes_accessed=int(2 * M * C * itemsize),
        )
        out = pl.pallas_call(
            _l2norm_packed_kernel,
            out_shape=jax.ShapeDtypeStruct((Mw, L), x.dtype),
            grid_spec=pltpu.PrefetchScalarGridSpec(
                num_scalar_prefetch=0,
                grid=grid,
                in_specs=[
                    pl.BlockSpec((tile_m, L), lambda i: (i, 0)),
                    pl.BlockSpec((L, L), lambda i: (0, 0)),   # constant block, not re-fetched
                ],
                out_specs=pl.BlockSpec((tile_m, L), lambda i: (i, 0)),
            ),
            compiler_params=compiler_params,
            cost_estimate=cost,
        )(xw, bd)
    else:
        cost = pl.CostEstimate(
            flops=int(3 * M * C),
            transcendentals=int(M),
            bytes_accessed=int(2 * M * C * itemsize),
        )
        out = pl.pallas_call(
            _l2norm_kernel,
            out_shape=jax.ShapeDtypeStruct((Mw, L), x.dtype),
            grid_spec=pltpu.PrefetchScalarGridSpec(
                num_scalar_prefetch=0,
                grid=grid,
                in_specs=[pl.BlockSpec((tile_m, L), lambda i: (i, 0))],
                out_specs=pl.BlockSpec((tile_m, L), lambda i: (i, 0)),
            ),
            compiler_params=compiler_params,
            cost_estimate=cost,
        )(xw)

    return out.reshape(orig_shape)


# ---------------------------------------------------------------------------
# Reference + self-test
# ---------------------------------------------------------------------------
def l2norm_ref(x: jax.Array) -> jax.Array:
    xf = x.astype(jnp.float32)
    norm = jnp.sqrt(jnp.sum(xf * xf, axis=-1, keepdims=True))
    return (xf / jnp.maximum(norm, _EPS)).astype(x.dtype)


if __name__ == "__main__":
    key = jax.random.PRNGKey(0)

    # Shapes consistent with the RWKV forward: (B, T, C), normalize over C.
    # C=32 < 128 and M=B*T divisible by 128//C=4  ->  lane-dense packed path.
    B, T, C = 2, 8, 32
    x = jax.random.normal(key, (B, T, C), dtype=jnp.float32)
    y = jax.block_until_ready(l2norm(x))
    y_ref = l2norm_ref(x)
    assert y.shape == x.shape and y.dtype == x.dtype
    assert jnp.allclose(y, y_ref, atol=1e-5, rtol=1e-5)

    # Row count NOT divisible by the packing factor or the tile -> fallback
    # (lane-reduction) path with a partial final grid block.
    x2 = jax.random.normal(jax.random.PRNGKey(1), (3, 5, 32), dtype=jnp.float32)
    y2 = jax.block_until_ready(l2norm(x2))
    y2_ref = l2norm_ref(x2)
    assert y2.shape == x2.shape and y2.dtype == x2.dtype
    assert jnp.allclose(y2, y2_ref, atol=1e-5, rtol=1e-5)

    # bf16 input, C=64 (pack=2): exercises sub-32-bit sublane packing + fp32
    # intermediate budgeting; dtype must be preserved.
    x3 = jax.random.normal(jax.random.PRNGKey(2), (4, 16, 64), dtype=jnp.bfloat16)
    y3 = jax.block_until_ready(l2norm(x3))
    y3_ref = l2norm_ref(x3)
    assert y3.shape == x3.shape and y3.dtype == x3.dtype
    assert jnp.allclose(y3.astype(jnp.float32), y3_ref.astype(jnp.float32),
                        atol=1e-2, rtol=1e-2)

    print("KERNEL_OK")
</pallas_src>

<mosaic_0001>
module attributes {stable_mosaic.version = 11 : i64} {
  func.func @_l2norm_packed_kernel(%arg0: i32, %arg1: memref<8x128xf32, #tpu.memory_space<vmem>>, %arg2: memref<128x128xf32, #tpu.memory_space<vmem>>, %arg3: memref<8x128xf32, #tpu.memory_space<vmem>>) attributes {dimension_semantics = [#tpu.dimension_semantics<parallel>], iteration_bounds = array<i64: 1>, scalar_prefetch = 0 : i64, scratch_operands = 0 : i64, tpu.core_type = #tpu.core_type<tc>, window_params = [{transform_indices = @transform_0, window_bounds = array<i64: 8, 128>}, {pipeline_mode = #tpu.pipeline_mode<synchronous>, transform_indices = @transform_1, window_bounds = array<i64: 128, 128>}, {transform_indices = @transform_2, window_bounds = array<i64: 8, 128>}]} {
    %c0 = arith.constant 0 : index
    %c0_0 = arith.constant 0 : index
    %0 = vector.load %arg1[%c0, %c0_0] : memref<8x128xf32, #tpu.memory_space<vmem>>, vector<8x128xf32>
    %1 = arith.mulf %0, %0 : vector<8x128xf32>
    %c0_1 = arith.constant 0 : index
    %c0_2 = arith.constant 0 : index
    %2 = vector.load %arg2[%c0_1, %c0_2] : memref<128x128xf32, #tpu.memory_space<vmem>>, vector<128x128xf32>
    %cst = arith.constant dense<0.000000e+00> : vector<8x128xf32>
    %3 = tpu.matmul %1, %2, %cst {dimension_numbers = #tpu.dot_dimension_numbers<[1], [0], [0], [1], [0, 0, 1, 1], [], []>} : vector<8x128xf32>, vector<128x128xf32>, vector<8x128xf32> -> vector<8x128xf32>
    %cst_3 = arith.constant 1.000000e-24 : f32
    %4 = vector.broadcast %cst_3 : f32 to vector<8x128xf32>
    %5 = arith.maximumf %3, %4 : vector<8x128xf32>
    %6 = math.rsqrt %5 : vector<8x128xf32>
    %7 = arith.mulf %0, %6 : vector<8x128xf32>
    %c0_4 = arith.constant 0 : index
    %c0_5 = arith.constant 0 : index
    %8 = vector.load %arg3[%c0_4, %c0_5] : memref<8x128xf32, #tpu.memory_space<vmem>>, vector<8x128xf32>
    tpu.vector_store %arg3[%c0_4, %c0_5], %7 {strides = array<i32>} : memref<8x128xf32, #tpu.memory_space<vmem>>, vector<8x128xf32>,
    return
  }
  func.func @transform_0(%arg0: i32) -> (i32, i32) {
    %c0_i32 = arith.constant 0 : i32
    %c0_i32_0 = arith.constant 0 : i32
    return %arg0, %c0_i32 : i32, i32
  }
  func.func @transform_1(%arg0: i32) -> (i32, i32) {
    %c0_i32 = arith.constant 0 : i32
    %c0_i32_0 = arith.constant 0 : i32
    %c0_i32_1 = arith.constant 0 : i32
    return %c0_i32, %c0_i32_0 : i32, i32
  }
  func.func @transform_2(%arg0: i32) -> (i32, i32) {
    %c0_i32 = arith.constant 0 : i32
    %c0_i32_0 = arith.constant 0 : i32
    return %arg0, %c0_i32 : i32, i32
  }
}

</mosaic_0001>

<bundles_post_ra>
// kernel: tpu_custom_call.1
= control target key start
LH: loop header
LB: loop body
LE: loop exit
PB: predicated region body
PF: predicated region fallthrough
CT: control target
= control target key end

     0   :  { %7 = vsyncpa [#allocation3], 0  ;;  %s377_s0 = inlined_call_operand.hbm [shape: f32[4,128], index: 0, kind: input, shape index: {}]   ;;  %s378_s1 = inlined_call_operand.hbm [shape: f32[128,128], index: 1, kind: input, shape index: {}]   ;;  %s379_s2 = inlined_call_operand.hbm [shape: f32[4,128], index: 2, kind: output, shape index: {}]  }
   0x1   :  { %8 = vsyncpa [#allocation6], 0 }
   0x2   :  { %9 = vsyncpa [#allocation4], 0 }
   0x3   :  { %14 = vsyncadd [#allocation3], 64  ;;  %s310_s9 = smov [#allocation2]   ;;  %s238_s13 = scalar_lea.hbm %s377_s0, 64 }
   0x4   :  { %s15_s10 = sshll.u32 %s310_s9, 4  ;;  %p239_p0 = scmp.ne.s32.totalorder %s377_s0, %s238_s13  ;;  %s16_s10 = int_to_ptr.vmem [resolvable:$true] %s15_s10 }
   0x5   :  { %p242_p1 = scmp.lt.u32.totalorder %s238_s13, %s377_s0 }
   0x7   :  { %p244_p2 = pnand %p242_p1, %p239_p0 }
   0x9   :  { %247 = shalt.err (!%p244_p2)
}
   0xa   :  { %s248_s18 = scalar_lea.vmem %s16_s10, 64  ;;  %s252_s19 = scalar_lea.vmem %s16_s10, 128 }
   0xb   :  { %p249_p3 = scmp.ne.s32.totalorder %s16_s10, %s248_s18  ;;  %p253_p4 = scmp.lt.s32.totalorder %s16_s10, %s16_s10 }
   0xc   :  { %p254_p5 = scmp.lt.s32.totalorder %s252_s19, %s248_s18 }
   0xe   :  { %p255_p6 = por %p254_p5, %p253_p4 }
  0x10   :  { %p256_p7 = pnand %p255_p6, %p249_p3 }
  0x12   :  { %259 = shalt.err (!%p256_p7)
}
  0x13   :  { %s311_s20 = smov 64   ;;  %s312_s21 = smov 4  }
  0x14   :  { %21 = dma.hbm_to_vmem [thread:$0]  %s377_s0, 64, %s16_s10, [#allocation3], %s311_s20, %s311_s20, %s312_s21  }
  0x15   :  { %s313_s24 = smov [#allocation5]   ;;  %s260_s28 = scalar_lea.hbm %s378_s1, 2048 }
  0x16   :  { %s27_s25 = sshll.u32 %s313_s24, 4  ;;  %p261_p8 = scmp.ne.s32.totalorder %s378_s1, %s260_s28  ;;  %s28_s25 = int_to_ptr.vmem [resolvable:$true] %s27_s25 }
  0x17   :  { %p264_p9 = scmp.lt.u32.totalorder %s260_s28, %s378_s1 }
  0x19   :  { %p266_p10 = pnand %p264_p9, %p261_p8 }
  0x1b   :  { %269 = shalt.err (!%p266_p10)
}
  0x1c   :  { %s270_s5 = scalar_lea.vmem %s28_s25, 2048  ;;  %p275_p12 = scmp.lt.s32.totalorder %s28_s25, %s28_s25 }
  0x1d   :  { %p271_p11 = scmp.ne.s32.totalorder %s28_s25, %s270_s5  ;;  %p276_p13 = scmp.lt.s32.totalorder %s270_s5, %s270_s5 }
  0x1f   :  { %p277_p0 = por %p276_p13, %p275_p12 }
  0x21   :  { %p278_p1 = pnand %p277_p0, %p271_p11 }
  0x23   :  { %281 = shalt.err (!%p278_p1)
}
  0x24   :  { %s314_s0 = smov 128   ;;  %s315_s6 = smov 8  }
  0x25   :  { %33 = dma.hbm_to_vmem [thread:$0]  %s378_s1, 2048, %s28_s25, [#allocation6], %s314_s0, %s314_s0, %s315_s6  }
  0x26   :  { %304 = dma.done.wait [#allocation3], 128  }
  0x27   :  { %305 = vsyncadd [#allocation3], 4294967168 }
  0x28   :  { %306 = dma.done.wait [#allocation6], 2048  }
  0x29   :  { %307 = vsyncadd [#allocation6], 4294965248  ;;  %v316_v0 = vmov 0.0|0.0   ;;  %vm317_vm0 = vmmov 0   ;;  %v318_v1 = vmov 0.0   ;;  %v42_v2 = vld [vmem:[#allocation5] sm:$0xff] }
  0x2a   :  { %202 = vmatprep.subr.bf16.mxu0 %v316_v0  ;;  %199 = vmatprep.mubr.msk.f32.mxu0 %vm317_vm0, %v318_v1  ;;  %v43_v3 = vld [vmem:[#allocation5 + $0x8] sm:$0xff]  ;;  %v44_v4 = vld [vmem:[#allocation5 + $0x10] sm:$0xff]  ;;  %v45_v6 = vld [vmem:[#allocation5 + $0x18] sm:$0xff] }
  0x2b   :  { %v203_v5 = vpack.c.bf16 %v43_v3, %v42_v2  ;;  %v206_v7 = vpack.c.bf16 %v45_v6, %v44_v4  ;;  %v46_v8 = vld [vmem:[#allocation5 + $0x20] sm:$0xff]  ;;  %v47_v9 = vld [vmem:[#allocation5 + $0x28] sm:$0xff]  ;;  %v48_v11 = vld [vmem:[#allocation5 + $0x30] sm:$0xff] }
  0x2c   :  { %v209_v10 = vpack.c.bf16 %v47_v9, %v46_v8  ;;  %v49_v12 = vld [vmem:[#allocation5 + $0x38] sm:$0xff]  ;;  %v50_v14 = vld [vmem:[#allocation5 + $0x40] sm:$0xff]  ;;  %v51_v15 = vld [vmem:[#allocation5 + $0x48] sm:$0xff] }
  0x2d   :  { %204 = vmatpush3.bf16.msra.mxu0 %v203_v5  ;;  %v212_v13 = vpack.c.bf16 %v49_v12, %v48_v11  ;;  %v215_v16 = vpack.c.bf16 %v51_v15, %v50_v14  ;;  %v52_v17 = vld [vmem:[#allocation5 + $0x50] sm:$0xff]  ;;  %v53_v18 = vld [vmem:[#allocation5 + $0x58] sm:$0xff]  ;;  %v54_v20 = vld [vmem:[#allocation5 + $0x60] sm:$0xff] }
  0x2e   :  { %205 = vmatprep.subr.bf16.mxu0 %v316_v0  ;;  %v218_v19 = vpack.c.bf16 %v53_v18, %v52_v17  ;;  %v55_v21 = vld [vmem:[#allocation5 + $0x68] sm:$0xff]  ;;  %v56_v23 = vld [vmem:[#allocation5 + $0x70] sm:$0xff]  ;;  %v57_v24 = vld [vmem:[#allocation5 + $0x78] sm:$0xff] }
  0x2f   :  { %v221_v22 = vpack.c.bf16 %v55_v21, %v54_v20  ;;  %v224_v25 = vpack.c.bf16 %v57_v24, %v56_v23  ;;  %v40_v26 = vld [vmem:[#allocation2] sm:$0xff] }
  0x30   :  { %v41_v27 = vmul.f32 %v40_v26, %v40_v26 }
  0x31   :  { %207 = vmatpush3.bf16.msra.mxu0 %v206_v7 }
  0x32   :  { %208 = vmatprep.subr.bf16.mxu0 %v316_v0 }
  0x35   :  { %210 = vmatpush3.bf16.msra.mxu0 %v209_v10 }
  0x36   :  { %211 = vmatprep.subr.bf16.mxu0 %v316_v0 }
  0x39   :  { %213 = vmatpush3.bf16.msra.mxu0 %v212_v13 }
  0x3a   :  { %214 = vmatprep.subr.bf16.mxu0 %v316_v0 }
  0x3d   :  { %216 = vmatpush3.bf16.msra.mxu0 %v215_v16 }
  0x3e   :  { %217 = vmatprep.subr.bf16.mxu0 %v316_v0 }
  0x41   :  { %219 = vmatpush3.bf16.msra.mxu0 %v218_v19 }
  0x42   :  { %220 = vmatprep.subr.bf16.mxu0 %v316_v0 }
  0x45   :  { %222 = vmatpush3.bf16.msra.mxu0 %v221_v22 }
  0x46   :  { %223 = vmatprep.subr.bf16.mxu0 %v316_v0 }
  0x49   :  { %225 = vmatpush3.bf16.msra.mxu0 %v224_v25 }
  0x4c   :  { %200 = vmatmul.mubr.f32.vlgmr.msra.gmra.mrb[0].mxu0 %v41_v27 }
 0x11f   :  { %v124_v28 = vpop.f32.mrb[0].mxu0 }
 0x120   :  { %v128_v29 = vmax.f32 %v124_v28, 1e-24  ;;  %v201_v30 = vpop.f32.mrb[1].mxu0 }
 0x122   :  { %236 = vrsqrt.f32 %v128_v29 }
 0x12c   :  { %v237_v31 = vpop.eup %236 }
 0x12d   :  { %v130_v32 = vmul.f32 %v237_v31, %v40_v26 }
 0x12f   :  { %131 = vst [vmem:[#allocation7] sm:$0xff] %v130_v32 }
 0x130   :  { %136 = vsyncadd [#allocation4], 64  ;;  %s319_s1 = smov [#allocation7]  }
 0x131   :  { %s137_s9 = sshll.u32 %s319_s1, 4  ;;  %s138_s9 = int_to_ptr.vmem [resolvable:$true] %s137_s9 }
 0x132   :  { %s282_s10 = scalar_lea.vmem %s138_s9, 64  ;;  %s286_s11 = scalar_lea.vmem %s138_s9, 128 }
 0x133   :  { %p283_p2 = scmp.ne.s32.totalorder %s138_s9, %s282_s10  ;;  %p287_p3 = scmp.lt.s32.totalorder %s138_s9, %s138_s9 }
 0x134   :  { %p288_p4 = scmp.lt.s32.totalorder %s286_s11, %s282_s10 }
 0x136   :  { %p289_p5 = por %p288_p4, %p287_p3 }
 0x138   :  { %p290_p6 = pnand %p289_p5, %p283_p2 }
 0x13a   :  { %293 = shalt.err (!%p290_p6)
}
 0x13b   :  { %s294_s14 = scalar_lea.hbm %s379_s2, 64 }
 0x13c   :  { %p295_p7 = scmp.ne.s32.totalorder %s379_s2, %s294_s14  ;;  %p298_p8 = scmp.lt.u32.totalorder %s294_s14, %s379_s2 }
 0x13e   :  { %p300_p9 = pnand %p298_p8, %p295_p7 }
 0x140   :  { %303 = shalt.err (!%p300_p9)
}
 0x141   :  { %143 = dma.vmem_to_hbm [thread:$0]  %s138_s9, 64, %s379_s2, [#allocation4], %s311_s20, %s311_s20, %s312_s21  }
 0x142   :  { %308 = dma.done.wait [#allocation4], 128  }
 0x143   :  { %309 = vsyncadd [#allocation4], 4294967168 }
 0x144   :  { %147 = vsyncpa [#allocation3], 1 }
 0x145   :  { %148 = vsyncpa [#allocation6], 1 }
 0x146   :  { %149 = vsyncpa [#allocation4], 1 }

</bundles_post_ra>
